<compile_context>
chip_gen: v5e
topology: v5e:2x2
jax: 0.10.0
libtpu: 0.0.40
codegen_flags: <defaults>
</compile_context>

<pallas_src>
import functools

import jax
import jax.numpy as jnp
from jax import lax
from jax.experimental import pallas as pl
from jax.experimental.pallas import tpu as pltpu

_BN_EPS = 1e-5  # torch.nn.BatchNorm1d default eps


def _round_up(n, m):
    return (n + m - 1) // m * m


def _softplus(x):
    # numerically stable softplus = log(1 + exp(x)); EUP exp, VPU rest.
    return jnp.maximum(x, 0.0) + jnp.log1p(jnp.exp(-jnp.abs(x)))


def prodlda_encoder_kernel(x_ref, w1_ref, b1_ref, w2_ref, b2_ref,
                           wh_ref, bh_ref, out_ref, acc_ref,
                           *, batch, num_topics):
    """Grid = (K_tiles,) over the vocab axis of fc1.

    x_ref  : [B_pad, tk]      bf16   (k-th vocab slice of the input)
    w1_ref : [tk, H_pad]      bf16   (k-th vocab slice of fc1 weight)
    b1/b2  : [1, H_pad]       f32
    w2_ref : [H_pad, H_pad]   bf16
    wh_ref : [H_pad, T2_pad]  bf16   (fused [w_mu | w_logvar], zero-padded)
    bh_ref : [1, T2_pad]      f32
    out_ref: [B_pad, T2_pad]  f32    (cols [0,T): mu, cols [T,2T): scale)
    acc_ref: [B_pad, H_pad]   f32    fc1 accumulator (scratch)
    """
    k = pl.program_id(0)

    @pl.when(k == 0)
    def _init():
        acc_ref[...] = jnp.zeros_like(acc_ref)

    # fc1 partial product: bf16 operands, f32 accumulation on the MXU.
    acc_ref[...] += jnp.dot(x_ref[...], w1_ref[...],
                            preferred_element_type=jnp.float32)

    @pl.when(k == pl.num_programs(0) - 1)
    def _finish():
        h1 = _softplus(acc_ref[...] + b1_ref[...])
        h2 = _softplus(
            jnp.dot(h1.astype(jnp.bfloat16), w2_ref[...],
                    preferred_element_type=jnp.float32) + b2_ref[...])

        # Fused mu/logvar head -> single lane-dense [B_pad, T2_pad] slab.
        head = jnp.dot(h2.astype(jnp.bfloat16), wh_ref[...],
                       preferred_element_type=jnp.float32) + bh_ref[...]

        # BatchNorm1d(affine=False), training-mode statistics over the REAL
        # batch rows only (padded rows are masked out of the statistics).
        rows = lax.broadcasted_iota(jnp.int32, head.shape, 0)
        rmask = (rows < batch).astype(jnp.float32)
        inv_b = jnp.float32(1.0 / batch)
        mean = jnp.sum(head * rmask, axis=0, keepdims=True) * inv_b
        centered = head - mean
        var = jnp.sum(centered * centered * rmask, axis=0, keepdims=True) * inv_b
        norm = centered * lax.rsqrt(var + _BN_EPS)

        # Columns [0, T) hold mu; columns [T, 2T) hold logvar -> clamp + exp(0.5*).
        cols = lax.broadcasted_iota(jnp.int32, head.shape, 1)
        is_logvar = cols >= num_topics
        scale = jnp.exp(0.5 * jnp.clip(norm, -10.0, 10.0))
        out_ref[...] = jnp.where(is_logvar, scale, norm)


def prodlda_encoder(x, params, *, tk=512):
    """Runs the whole encoder as one K-tiled Pallas kernel.

    Returns (mu, scale): the parameters of the LogNormal posterior.
    """
    B, V = x.shape
    H = params["w1"].shape[1]
    T = params["w_mu"].shape[1]
    T2 = 2 * T

    # Hardware-friendly padded sizes.
    B_pad = _round_up(B, 8)          # sublane multiple
    H_pad = _round_up(H, 128)        # full-width lanes for fc2 / heads
    T2_pad = _round_up(T2, 128)      # lane-dense output slab
    tk = min(tk, _round_up(V, 128))  # vocab tile (multiple of 128 lanes)
    V_pad = _round_up(V, tk)
    kt = V_pad // tk

    f32, bf16 = jnp.float32, jnp.bfloat16

    def pad2(a, r, c):
        return jnp.pad(a, ((0, r - a.shape[0]), (0, c - a.shape[1])))

    # Zero padding is exact: padded vocab rows / hidden rows of the next layer's
    # weights are zero, so padded columns never influence real outputs, and the
    # BN statistics are masked to the real batch rows inside the kernel.
    x_p = pad2(x.astype(f32), B_pad, V_pad).astype(bf16)
    w1 = pad2(params["w1"], V_pad, H_pad).astype(bf16)
    b1 = pad2(params["b1"], 1, H_pad).astype(f32)
    w2 = pad2(params["w2"], H_pad, H_pad).astype(bf16)
    b2 = pad2(params["b2"], 1, H_pad).astype(f32)
    wh = pad2(jnp.concatenate([params["w_mu"], params["w_lv"]], axis=1),
              H_pad, T2_pad).astype(bf16)
    bh = pad2(jnp.concatenate([params["b_mu"], params["b_lv"]], axis=1),
              1, T2_pad).astype(f32)

    kernel = functools.partial(prodlda_encoder_kernel, batch=B, num_topics=T)

    flops = 2 * B_pad * (V_pad * H_pad + H_pad * H_pad + H_pad * T2_pad)
    transcendentals = B_pad * (2 * H_pad + T2_pad)
    bytes_accessed = (2 * (V_pad * H_pad + H_pad * H_pad + H_pad * T2_pad)  # bf16 weights
                      + 2 * B_pad * V_pad                                   # bf16 x
                      + 4 * (2 * H_pad + T2_pad)                            # f32 biases
                      + 4 * B_pad * T2_pad)                                 # f32 out

    out = pl.pallas_call(
        kernel,
        out_shape=jax.ShapeDtypeStruct((B_pad, T2_pad), f32),
        grid_spec=pltpu.PrefetchScalarGridSpec(
            num_scalar_prefetch=0,
            grid=(kt,),
            in_specs=[
                pl.BlockSpec((B_pad, tk), lambda k: (0, k)),      # x slice
                pl.BlockSpec((tk, H_pad), lambda k: (k, 0)),      # w1 slice (streamed)
                pl.BlockSpec((1, H_pad), lambda k: (0, 0)),       # b1
                pl.BlockSpec((H_pad, H_pad), lambda k: (0, 0)),   # w2
                pl.BlockSpec((1, H_pad), lambda k: (0, 0)),       # b2
                pl.BlockSpec((H_pad, T2_pad), lambda k: (0, 0)),  # fused head weight
                pl.BlockSpec((1, T2_pad), lambda k: (0, 0)),      # fused head bias
            ],
            out_specs=pl.BlockSpec((B_pad, T2_pad), lambda k: (0, 0)),
            scratch_shapes=[pltpu.VMEM((B_pad, H_pad), f32)],
        ),
        compiler_params=pltpu.CompilerParams(
            dimension_semantics=("arbitrary",),          # K is a reduction axis
            vmem_limit_bytes=48 * 1024 * 1024,           # fits v7x's 64 MiB physical VMEM
        ),
        cost_estimate=pl.CostEstimate(flops=flops,
                                      transcendentals=transcendentals,
                                      bytes_accessed=bytes_accessed),
    )(x_p, w1, b1, w2, b2, wh, bh)

    mu = out[:B, :T]
    scale = out[:B, T:T2]
    return mu, scale


def init_params(key, vocab_size, num_topics, hidden_size):
    """Deterministic PyTorch-Linear-style init (uniform +/- 1/sqrt(fan_in)).

    Weights are stored transposed: [in_features, out_features]; biases [1, out].
    """
    def linear(k, fan_in, fan_out):
        kw, kb = jax.random.split(k)
        bound = 1.0 / jnp.sqrt(fan_in)
        w = jax.random.uniform(kw, (fan_in, fan_out), jnp.float32, -bound, bound)
        b = jax.random.uniform(kb, (1, fan_out), jnp.float32, -bound, bound)
        return w, b

    k1, k2, k3, k4 = jax.random.split(key, 4)
    w1, b1 = linear(k1, vocab_size, hidden_size)
    w2, b2 = linear(k2, hidden_size, hidden_size)
    w_mu, b_mu = linear(k3, hidden_size, num_topics)
    w_lv, b_lv = linear(k4, hidden_size, num_topics)
    return dict(w1=w1, b1=b1, w2=w2, b2=b2,
                w_mu=w_mu, b_mu=b_mu, w_lv=w_lv, b_lv=b_lv)


def reference_forward(x, p):
    """Pure-JAX reference with matching bf16-matmul / f32-accumulate precision."""
    def dot_bf16(a, b):
        return jnp.dot(a.astype(jnp.bfloat16), b.astype(jnp.bfloat16),
                       preferred_element_type=jnp.float32)

    h1 = jax.nn.softplus(dot_bf16(x, p["w1"]) + p["b1"])
    h2 = jax.nn.softplus(dot_bf16(h1, p["w2"]) + p["b2"])

    def bn(z):
        m = jnp.mean(z, axis=0, keepdims=True)
        v = jnp.mean((z - m) ** 2, axis=0, keepdims=True)
        return (z - m) / jnp.sqrt(v + _BN_EPS)

    mu = bn(dot_bf16(h2, p["w_mu"]) + p["b_mu"])
    logvar = jnp.clip(bn(dot_bf16(h2, p["w_lv"]) + p["b_lv"]), -10.0, 10.0)
    return mu, jnp.exp(0.5 * logvar)


if __name__ == "__main__":
    # Small shapes consistent with the module: bag-of-words input [B, vocab_size].
    B, VOCAB, TOPICS, HIDDEN = 8, 64, 16, 32

    key = jax.random.PRNGKey(0)
    k_params, k_x = jax.random.split(key)
    params = init_params(k_params, VOCAB, TOPICS, HIDDEN)

    # Synthetic bag-of-words counts.
    x = jnp.floor(
        5.0 * jax.random.uniform(k_x, (B, VOCAB), jnp.float32)).astype(jnp.float32)

    mu, scale = prodlda_encoder(x, params)
    jax.block_until_ready((mu, scale))

    mu_ref, scale_ref = reference_forward(x, params)
    assert mu.shape == (B, TOPICS) and scale.shape == (B, TOPICS)
    # bf16 matmuls + different accumulation order => looser tolerance than pure f32.
    assert jnp.allclose(mu, mu_ref, atol=2e-2, rtol=2e-2)
    assert jnp.allclose(scale, scale_ref, atol=2e-2, rtol=2e-2)

    print("KERNEL_OK")
</pallas_src>

<mosaic_0001>
module attributes {stable_mosaic.version = 11 : i64} {
  func.func @prodlda_encoder_kernel(%arg0: i32, %arg1: memref<8x128xbf16, #tpu.memory_space<vmem>>, %arg2: memref<128x128xbf16, #tpu.memory_space<vmem>>, %arg3: memref<1x128xf32, #tpu.memory_space<vmem>>, %arg4: memref<128x128xbf16, #tpu.memory_space<vmem>>, %arg5: memref<1x128xf32, #tpu.memory_space<vmem>>, %arg6: memref<128x128xbf16, #tpu.memory_space<vmem>>, %arg7: memref<1x128xf32, #tpu.memory_space<vmem>>, %arg8: memref<8x128xf32, #tpu.memory_space<vmem>>, %arg9: memref<8x128xf32, #tpu.memory_space<vmem>>) attributes {dimension_semantics = [#tpu.dimension_semantics<arbitrary>], iteration_bounds = array<i64: 1>, scalar_prefetch = 0 : i64, scratch_operands = 1 : i64, tpu.core_type = #tpu.core_type<tc>, window_params = [{transform_indices = @transform_0, window_bounds = array<i64: 8, 128>}, {transform_indices = @transform_1, window_bounds = array<i64: 128, 128>}, {pipeline_mode = #tpu.pipeline_mode<synchronous>, transform_indices = @transform_2, window_bounds = array<i64: 1, 128>}, {pipeline_mode = #tpu.pipeline_mode<synchronous>, transform_indices = @transform_3, window_bounds = array<i64: 128, 128>}, {pipeline_mode = #tpu.pipeline_mode<synchronous>, transform_indices = @transform_4, window_bounds = array<i64: 1, 128>}, {pipeline_mode = #tpu.pipeline_mode<synchronous>, transform_indices = @transform_5, window_bounds = array<i64: 128, 128>}, {pipeline_mode = #tpu.pipeline_mode<synchronous>, transform_indices = @transform_6, window_bounds = array<i64: 1, 128>}, {pipeline_mode = #tpu.pipeline_mode<synchronous>, transform_indices = @transform_7, window_bounds = array<i64: 8, 128>}]} {
    %c0_i32 = arith.constant 0 : i32
    %0 = arith.cmpi eq, %arg0, %c0_i32 : i32
    %1 = arith.extui %0 : i1 to i32
    %c0_i32_0 = arith.constant 0 : i32
    %2 = arith.cmpi ne, %1, %c0_i32_0 : i32
    scf.if %2 {
      %cst_10 = arith.constant 0.000000e+00 : f32
      %12 = vector.broadcast %cst_10 : f32 to vector<8x128xf32>
      %c0_11 = arith.constant 0 : index
      %c0_12 = arith.constant 0 : index
      %13 = vector.load %arg9[%c0_11, %c0_12] : memref<8x128xf32, #tpu.memory_space<vmem>>, vector<8x128xf32>
      tpu.vector_store %arg9[%c0_11, %c0_12], %12 {strides = array<i32>} : memref<8x128xf32, #tpu.memory_space<vmem>>, vector<8x128xf32>,
    } else {
    }
    %c0 = arith.constant 0 : index
    %c0_1 = arith.constant 0 : index
    %3 = vector.load %arg9[%c0, %c0_1] : memref<8x128xf32, #tpu.memory_space<vmem>>, vector<8x128xf32>
    %c0_2 = arith.constant 0 : index
    %c0_3 = arith.constant 0 : index
    %4 = vector.load %arg1[%c0_2, %c0_3] : memref<8x128xbf16, #tpu.memory_space<vmem>>, vector<8x128xbf16>
    %c0_4 = arith.constant 0 : index
    %c0_5 = arith.constant 0 : index
    %5 = vector.load %arg2[%c0_4, %c0_5] : memref<128x128xbf16, #tpu.memory_space<vmem>>, vector<128x128xbf16>
    %cst = arith.constant dense<0.000000e+00> : vector<8x128xf32>
    %6 = tpu.matmul %4, %5, %cst {dimension_numbers = #tpu.dot_dimension_numbers<[1], [0], [0], [1], [0, 0, 1, 1], [], []>} : vector<8x128xbf16>, vector<128x128xbf16>, vector<8x128xf32> -> vector<8x128xf32>
    %7 = arith.addf %3, %6 : vector<8x128xf32>
    %c0_6 = arith.constant 0 : index
    %c0_7 = arith.constant 0 : index
    %8 = vector.load %arg9[%c0_6, %c0_7] : memref<8x128xf32, #tpu.memory_space<vmem>>, vector<8x128xf32>
    tpu.vector_store %arg9[%c0_6, %c0_7], %7 {strides = array<i32>} : memref<8x128xf32, #tpu.memory_space<vmem>>, vector<8x128xf32>,
    %c0_i32_8 = arith.constant 0 : i32
    %9 = arith.cmpi eq, %arg0, %c0_i32_8 : i32
    %10 = arith.extui %9 : i1 to i32
    %c0_i32_9 = arith.constant 0 : i32
    %11 = arith.cmpi ne, %10, %c0_i32_9 : i32
    scf.if %11 {
      %c0_10 = arith.constant 0 : index
      %c0_11 = arith.constant 0 : index
      %12 = vector.load %arg9[%c0_10, %c0_11] : memref<8x128xf32, #tpu.memory_space<vmem>>, vector<8x128xf32>
      %c0_12 = arith.constant 0 : index
      %c0_13 = arith.constant 0 : index
      %13 = vector.load %arg3[%c0_12, %c0_13] : memref<1x128xf32, #tpu.memory_space<vmem>>, vector<1x128xf32>
      %14 = vector.broadcast %13 : vector<1x128xf32> to vector<8x128xf32>
      %15 = arith.addf %12, %14 : vector<8x128xf32>
      %cst_14 = arith.constant 0.000000e+00 : f32
      %16 = vector.broadcast %cst_14 : f32 to vector<8x128xf32>
      %17 = arith.maximumf %15, %16 : vector<8x128xf32>
      %18 = math.absf %15 : vector<8x128xf32>
      %cst_15 = arith.constant 0.000000e+00 : f32
      %19 = vector.broadcast %cst_15 : f32 to vector<8x128xf32>
      %20 = arith.subf %19, %18 : vector<8x128xf32>
      %21 = math.exp %20 : vector<8x128xf32>
      %22 = math.log1p %21 : vector<8x128xf32>
      %23 = arith.addf %17, %22 : vector<8x128xf32>
      %24 = arith.truncf %23 : vector<8x128xf32> to vector<8x128xbf16>
      %c0_16 = arith.constant 0 : index
      %c0_17 = arith.constant 0 : index
      %25 = vector.load %arg4[%c0_16, %c0_17] : memref<128x128xbf16, #tpu.memory_space<vmem>>, vector<128x128xbf16>
      %cst_18 = arith.constant dense<0.000000e+00> : vector<8x128xf32>
      %26 = tpu.matmul %24, %25, %cst_18 {dimension_numbers = #tpu.dot_dimension_numbers<[1], [0], [0], [1], [0, 0, 1, 1], [], []>} : vector<8x128xbf16>, vector<128x128xbf16>, vector<8x128xf32> -> vector<8x128xf32>
      %c0_19 = arith.constant 0 : index
      %c0_20 = arith.constant 0 : index
      %27 = vector.load %arg5[%c0_19, %c0_20] : memref<1x128xf32, #tpu.memory_space<vmem>>, vector<1x128xf32>
      %28 = vector.broadcast %27 : vector<1x128xf32> to vector<8x128xf32>
      %29 = arith.addf %26, %28 : vector<8x128xf32>
      %cst_21 = arith.constant 0.000000e+00 : f32
      %30 = vector.broadcast %cst_21 : f32 to vector<8x128xf32>
      %31 = arith.maximumf %29, %30 : vector<8x128xf32>
      %32 = math.absf %29 : vector<8x128xf32>
      %cst_22 = arith.constant 0.000000e+00 : f32
      %33 = vector.broadcast %cst_22 : f32 to vector<8x128xf32>
      %34 = arith.subf %33, %32 : vector<8x128xf32>
      %35 = math.exp %34 : vector<8x128xf32>
      %36 = math.log1p %35 : vector<8x128xf32>
      %37 = arith.addf %31, %36 : vector<8x128xf32>
      %38 = arith.truncf %37 : vector<8x128xf32> to vector<8x128xbf16>
      %c0_23 = arith.constant 0 : index
      %c0_24 = arith.constant 0 : index
      %39 = vector.load %arg6[%c0_23, %c0_24] : memref<128x128xbf16, #tpu.memory_space<vmem>>, vector<128x128xbf16>
      %cst_25 = arith.constant dense<0.000000e+00> : vector<8x128xf32>
      %40 = tpu.matmul %38, %39, %cst_25 {dimension_numbers = #tpu.dot_dimension_numbers<[1], [0], [0], [1], [0, 0, 1, 1], [], []>} : vector<8x128xbf16>, vector<128x128xbf16>, vector<8x128xf32> -> vector<8x128xf32>
      %c0_26 = arith.constant 0 : index
      %c0_27 = arith.constant 0 : index
      %41 = vector.load %arg7[%c0_26, %c0_27] : memref<1x128xf32, #tpu.memory_space<vmem>>, vector<1x128xf32>
      %42 = vector.broadcast %41 : vector<1x128xf32> to vector<8x128xf32>
      %43 = arith.addf %40, %42 : vector<8x128xf32>
      %44 = tpu.iota {dimensions = array<i32: 0>} : vector<8x128xi32>
      %c8_i32 = arith.constant 8 : i32
      %45 = vector.broadcast %c8_i32 : i32 to vector<8x128xi32>
      %46 = arith.cmpi slt, %44, %45 : vector<8x128xi32>
      %47 = arith.extui %46 : vector<8x128xi1> to vector<8x128xi32>
      %48 = arith.sitofp %47 : vector<8x128xi32> to vector<8x128xf32>
      %49 = arith.mulf %43, %48 : vector<8x128xf32>
      %cst_28 = arith.constant dense<0.000000e+00> : vector<128xf32>
      %50 = vector.multi_reduction <add>, %49, %cst_28 [0] : vector<8x128xf32> to vector<128xf32>
      %51 = vector.shape_cast %50 : vector<128xf32> to vector<1x128xf32>
      %cst_29 = arith.constant 1.250000e-01 : f32
      %52 = vector.broadcast %cst_29 : f32 to vector<1x128xf32>
      %53 = arith.mulf %51, %52 : vector<1x128xf32>
      %54 = vector.broadcast %53 : vector<1x128xf32> to vector<8x128xf32>
      %55 = arith.subf %43, %54 : vector<8x128xf32>
      %56 = arith.mulf %55, %55 : vector<8x128xf32>
      %57 = arith.mulf %56, %48 : vector<8x128xf32>
      %cst_30 = arith.constant dense<0.000000e+00> : vector<128xf32>
      %58 = vector.multi_reduction <add>, %57, %cst_30 [0] : vector<8x128xf32> to vector<128xf32>
      %59 = vector.shape_cast %58 : vector<128xf32> to vector<1x128xf32>
      %cst_31 = arith.constant 1.250000e-01 : f32
      %60 = vector.broadcast %cst_31 : f32 to vector<1x128xf32>
      %61 = arith.mulf %59, %60 : vector<1x128xf32>
      %cst_32 = arith.constant 9.99999974E-6 : f32
      %62 = vector.broadcast %cst_32 : f32 to vector<1x128xf32>
      %63 = arith.addf %61, %62 : vector<1x128xf32>
      %64 = math.rsqrt %63 : vector<1x128xf32>
      %65 = vector.broadcast %64 : vector<1x128xf32> to vector<8x128xf32>
      %66 = arith.mulf %55, %65 : vector<8x128xf32>
      %67 = tpu.iota {dimensions = array<i32: 1>} : vector<8x128xi32>
      %c16_i32 = arith.constant 16 : i32
      %68 = vector.broadcast %c16_i32 : i32 to vector<8x128xi32>
      %69 = arith.cmpi sge, %67, %68 : vector<8x128xi32>
      %cst_33 = arith.constant -1.000000e+01 : f32
      %cst_34 = arith.constant 1.000000e+01 : f32
      %70 = vector.broadcast %cst_33 : f32 to vector<8x128xf32>
      %71 = arith.maximumf %70, %66 : vector<8x128xf32>
      %72 = vector.broadcast %cst_34 : f32 to vector<8x128xf32>
      %73 = arith.minimumf %72, %71 : vector<8x128xf32>
      %cst_35 = arith.constant 5.000000e-01 : f32
      %74 = vector.broadcast %cst_35 : f32 to vector<8x128xf32>
      %75 = arith.mulf %74, %73 : vector<8x128xf32>
      %76 = math.exp %75 : vector<8x128xf32>
      %77 = arith.select %69, %76, %66 : vector<8x128xi1>, vector<8x128xf32>
      %c0_36 = arith.constant 0 : index
      %c0_37 = arith.constant 0 : index
      %78 = vector.load %arg8[%c0_36, %c0_37] : memref<8x128xf32, #tpu.memory_space<vmem>>, vector<8x128xf32>
      tpu.vector_store %arg8[%c0_36, %c0_37], %77 {strides = array<i32>} : memref<8x128xf32, #tpu.memory_space<vmem>>, vector<8x128xf32>,
    } else {
    }
    return
  }
  func.func @transform_0(%arg0: i32) -> (i32, i32) {
    %c0_i32 = arith.constant 0 : i32
    %c0_i32_0 = arith.constant 0 : i32
    return %c0_i32, %arg0 : i32, i32
  }
  func.func @transform_1(%arg0: i32) -> (i32, i32) {
    %c0_i32 = arith.constant 0 : i32
    %c0_i32_0 = arith.constant 0 : i32
    return %arg0, %c0_i32 : i32, i32
  }
  func.func @transform_2(%arg0: i32) -> (i32, i32) {
    %c0_i32 = arith.constant 0 : i32
    %c0_i32_0 = arith.constant 0 : i32
    %c0_i32_1 = arith.constant 0 : i32
    return %c0_i32, %c0_i32_0 : i32, i32
  }
  func.func @transform_3(%arg0: i32) -> (i32, i32) {
    %c0_i32 = arith.constant 0 : i32
    %c0_i32_0 = arith.constant 0 : i32
    %c0_i32_1 = arith.constant 0 : i32
    return %c0_i32, %c0_i32_0 : i32, i32
  }
  func.func @transform_4(%arg0: i32) -> (i32, i32) {
    %c0_i32 = arith.constant 0 : i32
    %c0_i32_0 = arith.constant 0 : i32
    %c0_i32_1 = arith.constant 0 : i32
    return %c0_i32, %c0_i32_0 : i32, i32
  }
  func.func @transform_5(%arg0: i32) -> (i32, i32) {
    %c0_i32 = arith.constant 0 : i32
    %c0_i32_0 = arith.constant 0 : i32
    %c0_i32_1 = arith.constant 0 : i32
    return %c0_i32, %c0_i32_0 : i32, i32
  }
  func.func @transform_6(%arg0: i32) -> (i32, i32) {
    %c0_i32 = arith.constant 0 : i32
    %c0_i32_0 = arith.constant 0 : i32
    %c0_i32_1 = arith.constant 0 : i32
    return %c0_i32, %c0_i32_0 : i32, i32
  }
  func.func @transform_7(%arg0: i32) -> (i32, i32) {
    %c0_i32 = arith.constant 0 : i32
    %c0_i32_0 = arith.constant 0 : i32
    %c0_i32_1 = arith.constant 0 : i32
    return %c0_i32, %c0_i32_0 : i32, i32
  }
}

</mosaic_0001>

<bundles_post_ra>
// kernel: tpu_custom_call.1
= control target key start
LH: loop header
LB: loop body
LE: loop exit
PB: predicated region body
PF: predicated region fallthrough
CT: control target
= control target key end

     0   :  { %12 = vsyncpa [#allocation4], 0  ;;  %s783_s0 = inlined_call_operand.hbm [shape: bf16[8,128], index: 0, kind: input, shape index: {}]   ;;  %s784_s1 = inlined_call_operand.hbm [shape: bf16[128,128], index: 1, kind: input, shape index: {}]   ;;  %s785_s2 = inlined_call_operand.vmem [shape: f32[1,128], index: 2, kind: input, shape index: {}]   ;;  %s786_s3 = inlined_call_operand.hbm [shape: bf16[128,128], index: 3, kind: input, shape index: {}]   ;;  %s787_s4 = inlined_call_operand.vmem [shape: f32[1,128], index: 4, kind: input, shape index: {}]   ;;  %s788_s5 = inlined_call_operand.hbm [shape: bf16[128,128], index: 5, kind: input, shape index: {}]   ;;  %s789_s6 = inlined_call_operand.vmem [shape: f32[1,128], index: 6, kind: input, shape index: {}]   ;;  %s790_s7 = inlined_call_operand.hbm [shape: f32[8,128], index: 7, kind: output, shape index: {}]  }
   0x1   :  { %13 = vsyncpa [#allocation7], 0 }
   0x2   :  { %14 = vsyncpa [#allocation10], 0  ;;  %s31_s26 = sshll.u32 %s784_s1, 4  ;;  %s32_s26 = int_to_ptr.hbm [resolvable:$true] %s31_s26 }
   0x3   :  { %15 = vsyncpa [#allocation5], 0  ;;  %s712_s27 = smov [#allocation6]   ;;  %s21_s8 = sshll.u32 %s783_s0, 4  ;;  %s22_s8 = int_to_ptr.hbm [resolvable:$true] %s21_s8 }
   0x4   :  { %s33_s28 = sshll.u32 %s712_s27, 4  ;;  %s713_s9 = smov 64   ;;  %s34_s28 = int_to_ptr.vmem [resolvable:$true] %s33_s28 }
   0x5   :  { %s714_s10 = smov 4   ;;  %s715_s11 = smov [#allocation3]  }
   0x6   :  { %39 = dma.hbm_to_vmem [thread:$0]  %s32_s26, 1024, %s34_s28, [#allocation7], %s713_s9, %s713_s9, %s714_s10  }
   0x7   :  { %s23_s12 = sshll.u32 %s715_s11, 4  ;;  %s46_s15 = sshll.u32 %s786_s3, 4  ;;  %s24_s12 = int_to_ptr.vmem [resolvable:$true] %s23_s12  ;;  %s47_s15 = int_to_ptr.hbm [resolvable:$true] %s46_s15 }
   0x8   :  { %26 = dma.hbm_to_vmem [thread:$0]  %s22_s8, 64, %s24_s12, [#allocation4]  }
   0x9   :  { %s61_s17 = sshll.u32 %s788_s5, 4  ;;  %s716_s18 = smov [#allocation8]   ;;  %s62_s17 = int_to_ptr.hbm [resolvable:$true] %s61_s17 }
   0xa   :  { %s48_s19 = sshll.u32 %s716_s18, 4  ;;  %s717_s0 = smov [#allocation9]   ;;  %s49_s19 = int_to_ptr.vmem [resolvable:$true] %s48_s19 }
   0xb   :  { %54 = dma.hbm_to_vmem [thread:$0]  %s47_s15, 1024, %s49_s19, [#allocation7], %s713_s9, %s713_s9, %s714_s10  }
   0xc   :  { %s63_s20 = sshll.u32 %s717_s0, 4  ;;  %s64_s20 = int_to_ptr.vmem [resolvable:$true] %s63_s20 }
   0xd   :  { %69 = dma.hbm_to_vmem [thread:$0]  %s62_s17, 1024, %s64_s20, [#allocation10], %s713_s9, %s713_s9, %s714_s10  }
   0xe   :  { %704 = dma.done.wait [#allocation4], 64  }
   0xf   :  { %705 = vsyncadd [#allocation4], 4294967232 }
  0x10   :  { %706 = dma.done.wait [#allocation7], 2048  }
  0x11   :  { %707 = vsyncadd [#allocation7], 4294965248 }
  0x12   :  { %708 = dma.done.wait [#allocation10], 1024  }
  0x13   :  { %709 = vsyncadd [#allocation10], 4294966272  ;;  %v545_v0 = vld [vmem:[#allocation6 + $0x38] sm:$0xff]  ;;  %v544_v1 = vld [vmem:[#allocation6 + $0x30] sm:$0xff]  ;;  %s429_s26 = sshll.u32 %s790_s7, 4  ;;  %s430_s26 = int_to_ptr.hbm [resolvable:$true] %s429_s26 }
  0x14   :  { %159 = vmatpush.bf16.msra.mxu0 %v545_v0  ;;  %v543_v2 = vld [vmem:[#allocation6 + $0x28] sm:$0xff]  ;;  %v542_v3 = vld [vmem:[#allocation6 + $0x20] sm:$0xff]  ;;  %v541_v4 = vld [vmem:[#allocation6 + $0x18] sm:$0xff] }
  0x15   :  { %v540_v5 = vld [vmem:[#allocation6 + $0x10] sm:$0xff]  ;;  %v539_v6 = vld [vmem:[#allocation6 + $0x8] sm:$0xff]  ;;  %v538_v7 = vld [vmem:[#allocation6] sm:$0xff] }
  0x16   :  { %v94_v8 = vld [vmem:[#allocation3] sm:$0xf]  ;;  %v552_v10 = vld [vmem:[#allocation8 + $0x30] sm:$0xff]  ;;  %v551_v11 = vld [vmem:[#allocation8 + $0x28] sm:$0xff] }
  0x17   :  { %v553_v9 = vld [vmem:[#allocation8 + $0x38] sm:$0xff]  ;;  %v550_v12 = vld [vmem:[#allocation8 + $0x20] sm:$0xff]  ;;  %v548_v14 = vld [vmem:[#allocation8 + $0x10] sm:$0xff] }
  0x18   :  { %160 = vmatpush.bf16.msra.mxu0 %v544_v1  ;;  %267 = vmatpush.bf16.msra.mxu1 %v553_v9  ;;  %v549_v13 = vld [vmem:[#allocation8 + $0x18] sm:$0xff]  ;;  %v547_v15 = vld [vmem:[#allocation8 + $0x8] sm:$0xff]  ;;  %v546_v16 = vld [vmem:[#allocation8] sm:$0xff] }
  0x19   :  { %v569_v17 = vld [vmem:[%s785_s2] ss:$0 sm:$0xff]  ;;  %v560_v37 = vld [vmem:[#allocation9 + $0x30] sm:$0xff]  ;;  %v559_v38 = vld [vmem:[#allocation9 + $0x28] sm:$0xff] }
  0x1a   :  { %v561_v36 = vld [vmem:[#allocation9 + $0x38] sm:$0xff]  ;;  %v558_v39 = vld [vmem:[#allocation9 + $0x20] sm:$0xff]  ;;  %v556_v41 = vld [vmem:[#allocation9 + $0x10] sm:$0xff] }
  0x1b   :  { %364 = vmatpush.bf16.msra.mxu2 %v561_v36  ;;  %v557_v40 = vld [vmem:[#allocation9 + $0x18] sm:$0xff]  ;;  %v555_v42 = vld [vmem:[#allocation9 + $0x8] sm:$0xff]  ;;  %v554_v43 = vld [vmem:[#allocation9] sm:$0xff] }
  0x1c   :  { %161 = vmatpush.bf16.msra.mxu0 %v543_v2  ;;  %268 = vmatpush.bf16.msra.mxu1 %v552_v10  ;;  %v570_v44 = vld [vmem:[%s787_s4] ss:$0 sm:$0xff] }
  0x1d   :  { %v571_v63 = vld [vmem:[%s789_s6] ss:$0 sm:$0xff]  ;;  %s718_s6 = smov [#allocation11]  }
  0x1e   :  { %s427_s23 = sshll.u32 %s718_s6, 4  ;;  %s428_s23 = int_to_ptr.vmem [resolvable:$true] %s427_s23 }
  0x1f   :  { %365 = vmatpush.bf16.msra.mxu2 %v560_v37 }
  0x20   :  { %162 = vmatpush.bf16.msra.mxu0 %v542_v3  ;;  %269 = vmatpush.bf16.msra.mxu1 %v551_v11 }
  0x23   :  { %366 = vmatpush.bf16.msra.mxu2 %v559_v38 }
  0x24   :  { %163 = vmatpush.bf16.msra.mxu0 %v541_v4  ;;  %270 = vmatpush.bf16.msra.mxu1 %v550_v12 }
  0x27   :  { %367 = vmatpush.bf16.msra.mxu2 %v558_v39 }
  0x28   :  { %164 = vmatpush.bf16.msra.mxu0 %v540_v5  ;;  %271 = vmatpush.bf16.msra.mxu1 %v549_v13 }
  0x2b   :  { %368 = vmatpush.bf16.msra.mxu2 %v557_v40 }
  0x2c   :  { %165 = vmatpush.bf16.msra.mxu0 %v539_v6  ;;  %272 = vmatpush.bf16.msra.mxu1 %v548_v14 }
  0x2f   :  { %369 = vmatpush.bf16.msra.mxu2 %v556_v41 }
  0x30   :  { %166 = vmatpush.bf16.msra.mxu0 %v538_v7  ;;  %273 = vmatpush.bf16.msra.mxu1 %v547_v15 }
  0x33   :  { %167 = vmatmul.bf16.vlgmr.msra.gmra.mxu0 %v94_v8  ;;  %370 = vmatpush.bf16.msra.mxu2 %v555_v42 }
  0x34   :  { %274 = vmatpush.bf16.msra.mxu1 %v546_v16 }
  0x37   :  { %371 = vmatpush.bf16.msra.mxu2 %v554_v43 }
  0xb0   :  { %v168_v18 = vpop.f32.mrf.mxu0 }
  0xb1   :  { %v182_v19 = vadd.f32 %v569_v17, %v168_v18 }
  0xb3   :  { %v184_v20 = vand.u32 2147483647, %v182_v19  ;;  %v183_v32 = vmax.f32 %v182_v19, 0.0 }
  0xb5   :  { %v185_v21 = vsub.f32 0.0, %v184_v20 }
  0xb7   :  { %v186_v22 = vmul.f32 1.442695, %v185_v21 }
  0xb8   :  { %v170_v23 = vpop.f32.mrf.mxu0 }
  0xb9   :  { %572 = vpow2.f32 %v186_v22 }
  0xbf   :  { %v573_v24 = vpop.eup %572 }
  0xc0   :  { %v188_v25 = vadd.f32 1.0, %v573_v24  ;;  %v191_v26 = vmul.f32 -0.5, %v573_v24  ;;  %v194_v28 = vand.u32 2147483647, %v573_v24 }
  0xc2   :  { %574 = vlog2.f32 %v188_v25  ;;  %v192_v27 = vadd.f32 1.0, %v191_v26  ;;  %vm195_vm0 = vcmp.lt.f32.partialorder %v194_v28, 0.0004427343 }
  0xc4   :  { %v193_v31 = vmul.f32 %v573_v24, %v192_v27 }
  0xc8   :  { %v575_v29 = vpop.eup %574 }
  0xc9   :  { %v190_v30 = vmul.f32 0.6931472, %v575_v29 }
  0xcb   :  { %v196_v33 = vsel %vm195_vm0, %v193_v31, %v190_v30  ;;  %v412_v30 = vlaneseq }
  0xcc   :  { %v197_v34 = vadd.f32 %v196_v33, %v183_v32 }
  0xcd   :  { %v413_v32 = vand.u32 127, %v412_v30 }
  0xce   :  { %v198_v35 = vpack.c.bf16 %v197_v34, %v197_v34 }
  0xcf   :  { %vm414_vm5 = vcmp.ge.s32.totalorder %v413_v32, 16 }
  0xd0   :  { %275 = vmatmul.bf16.vlgmr.msra.gmra.mxu1 %v198_v35 }
 0x14d   :  { %v276_v45 = vpop.f32.mrf.mxu1 }
 0x14e   :  { %v277_v46 = vadd.f32 %v570_v44, %v276_v45 }
 0x150   :  { %v281_v47 = vand.u32 2147483647, %v277_v46  ;;  %v280_v59 = vmax.f32 %v277_v46, 0.0 }
 0x152   :  { %v282_v48 = vsub.f32 0.0, %v281_v47 }
 0x154   :  { %v283_v49 = vmul.f32 1.442695, %v282_v48 }
 0x155   :  { %v278_v50 = vpop.f32.mrf.mxu1 }
 0x156   :  { %576 = vpow2.f32 %v283_v49 }
 0x15c   :  { %v577_v51 = vpop.eup %576 }
 0x15d   :  { %v285_v52 = vadd.f32 1.0, %v577_v51  ;;  %v288_v53 = vmul.f32 -0.5, %v577_v51  ;;  %v291_v55 = vand.u32 2147483647, %v577_v51 }
 0x15f   :  { %578 = vlog2.f32 %v285_v52  ;;  %v289_v54 = vadd.f32 1.0, %v288_v53  ;;  %vm292_vm1 = vcmp.lt.f32.partialorder %v291_v55, 0.0004427343 }
 0x161   :  { %v290_v58 = vmul.f32 %v577_v51, %v289_v54 }
 0x165   :  { %v579_v56 = vpop.eup %578 }
 0x166   :  { %v287_v57 = vmul.f32 0.6931472, %v579_v56 }
 0x168   :  { %v293_v60 = vsel %vm292_vm1, %v290_v58, %v287_v57 }
 0x169   :  { %v294_v61 = vadd.f32 %v293_v60, %v280_v59 }
 0x16b   :  { %v295_v62 = vpack.c.bf16 %v294_v61, %v294_v61 }
 0x16d   :  { %372 = vmatmul.bf16.vlgmr.msra.gmra.mxu2 %v295_v62 }
 0x1f0   :  { %v373_v0 = vpop.f32.mrf.mxu2 }
 0x1f1   :  { %v374_v1 = vadd.f32 %v571_v63, %v373_v0 }
 0x1f3   :  { %v383_v2 = vrot.slane %v374_v1, 4 }
 0x1f5   :  { %v384_v3 = vadd.f32 %v383_v2, %v374_v1 }
 0x1f7   :  { %v385_v4 = vrot.slane %v384_v3, 2 }
 0x1f8   :  { %v375_v5 = vpop.f32.mrf.mxu2 }
 0x1f9   :  { %v386_v6 = vadd.f32 %v385_v4, %v384_v3 }
 0x1fb   :  { %v387_v7 = vrot.slane %v386_v6, 1 }
 0x1fd   :  { %v388_v8 = vadd.f32 %v387_v7, %v386_v6 }
 0x1ff   :  { %v389_v9 = vmul.f32 0.125, %v388_v8 }
 0x201   :  { %v390_v10 = vsub.f32 %v374_v1, %v389_v9 }
 0x203   :  { %v391_v11 = vmul.f32 %v390_v10, %v390_v10 }
 0x205   :  { %v393_v12 = vrot.slane %v391_v11, 4 }
 0x207   :  { %v394_v13 = vadd.f32 %v393_v12, %v391_v11 }
 0x209   :  { %v395_v14 = vrot.slane %v394_v13, 2 }
 0x20b   :  { %v396_v15 = vadd.f32 %v395_v14, %v394_v13 }
 0x20d   :  { %v397_v16 = vrot.slane %v396_v15, 1 }
 0x20f   :  { %v398_v17 = vadd.f32 %v397_v16, %v396_v15 }
 0x211   :  { %v399_v18 = vmul.f32 0.125, %v398_v17 }
 0x213   :  { %v400_v19 = vadd.f32 1e-05, %v399_v18 }
 0x215   :  { %580 = vrsqrt.f32 %v400_v19  ;;  %vm407_vm3 = vweird.f32 %v400_v19 }
 0x21b   :  { %v581_v20 = vpop.eup %580 }
 0x21c   :  { %v402_v21 = vmul.f32 %v581_v20, %v400_v19  ;;  %vm408_vm2 = vweird.f32 %v581_v20 }
 0x21d   :  { %vm409_vm4 = vmor %vm407_vm3, %vm408_vm2 }
 0x21e   :  { %v403_v22 = vmul.f32 %v581_v20, %v402_v21 }
 0x220   :  { %v404_v23 = vmul.f32 0.5, %v403_v22 }
 0x222   :  { %v405_v24 = vsub.f32 1.5, %v404_v23 }
 0x224   :  { %v406_v25 = vmul.f32 %v581_v20, %v405_v24 }
 0x226   :  { %v410_v26 = vsel %vm409_vm4, %v581_v20, %v406_v25 }
 0x227   :  { %v411_v27 = vmul.f32 %v410_v26, %v390_v10 }
 0x229   :  { %v537_v28 = vclamps-f32 %v411_v27, 10.0 }
 0x22b   :  { %v417_v29 = vmul.f32 0.5, %v537_v28 }
 0x22d   :  { %v418_v31 = vmul.f32 1.442695, %v417_v29 }
 0x22f   :  { %582 = vpow2.f32 %v418_v31 }
 0x235   :  { %v583_v33 = vpop.eup %582 }
 0x236   :  { %v420_v34 = vsel %vm414_vm5, %v583_v33, %v411_v27 }
 0x237   :  { %421 = vst [vmem:[#allocation11] sm:$0xff] %v420_v34 }
 0x238   :  { %432 = dma.vmem_to_hbm [thread:$0]  %s428_s23, 128, %s430_s26, [#allocation5]  }
 0x239   :  { %710 = dma.done.wait [#allocation5], 128  }
 0x23a   :  { %711 = vsyncadd [#allocation5], 4294967168 }
 0x23b   :  { %437 = vsyncpa [#allocation4], 1 }
 0x23c   :  { %438 = vsyncpa [#allocation7], 1 }
 0x23d   :  { %439 = vsyncpa [#allocation10], 1 }
 0x23e   :  { %440 = vsyncpa [#allocation5], 1 }

</bundles_post_ra>
